<compile_context>
chip_gen: v5e
topology: v5e:2x2
jax: 0.10.0
libtpu: 0.0.40
codegen_flags: <defaults>
</compile_context>

<pallas_src>
import math

import jax
import jax.numpy as jnp
from jax.experimental import pallas as pl
from jax.experimental.pallas import tpu as pltpu


def _round_up(n, m):
    return ((n + m - 1) // m) * m


def _policy_kernel(x_ref, w1_ref, b1_ref, w2_ref, b2_ref, mean_ref):
    # fc1: [TB, S] @ [S, H] + [1, H], then ReLU.
    h = jnp.dot(x_ref[...], w1_ref[...], preferred_element_type=jnp.float32)
    h = jnp.maximum(h + b1_ref[...], 0.0)
    # fc2_mean: [TB, H] @ [H, A_pad] + [1, A_pad].
    out = jnp.dot(h, w2_ref[...], preferred_element_type=jnp.float32)
    mean_ref[...] = (out + b2_ref[...]).astype(mean_ref.dtype)


def policy_forward(x, w1, b1, w2, b2):
    """Returns (action_mean, scale) — the parameters of Normal(mean, sqrt(5))."""
    B, S = x.shape
    H = w1.shape[1]
    A = w2.shape[1]

    # --- lane-dense output padding: A -> multiple of 128 (zero-padded cols) ---
    A_pad = _round_up(A, 128)
    if A_pad != A:
        w2_p = jnp.pad(w2, ((0, 0), (0, A_pad - A)))
        b2_p = jnp.pad(b2, ((0, 0), (0, A_pad - A)))
    else:
        w2_p, b2_p = w2, b2

    # --- batch tiling: TB rows per grid step (multiple of 8 sublanes) --------
    TB = min(1024, _round_up(B, 8))
    B_pad = _round_up(B, TB)
    if B_pad != B:
        x_p = jnp.pad(x, ((0, B_pad - B), (0, 0)))
    else:
        x_p = x
    grid = (B_pad // TB,)

    flops = 2 * B_pad * (S * H + H * A_pad)
    bytes_accessed = 4 * (B_pad * S + S * H + H + H * A_pad + A_pad + B_pad * A_pad)

    mean_full = pl.pallas_call(
        _policy_kernel,
        out_shape=jax.ShapeDtypeStruct((B_pad, A_pad), jnp.float32),
        grid=grid,
        in_specs=[
            pl.BlockSpec((TB, S), lambda i: (i, 0)),        # x: streamed per tile
            pl.BlockSpec((S, H), lambda i: (0, 0)),         # w1: resident
            pl.BlockSpec((1, H), lambda i: (0, 0)),         # b1: resident
            pl.BlockSpec((H, A_pad), lambda i: (0, 0)),     # w2: resident
            pl.BlockSpec((1, A_pad), lambda i: (0, 0)),     # b2: resident
        ],
        out_specs=pl.BlockSpec((TB, A_pad), lambda i: (i, 0)),
        compiler_params=pltpu.CompilerParams(
            dimension_semantics=("parallel",),
        ),
        cost_estimate=pl.CostEstimate(
            flops=flops, transcendentals=0, bytes_accessed=bytes_accessed
        ),
    )(x_p, w1, b1, w2_p, b2_p)

    mean = mean_full[:B, :A]

    # TODO(synk): torch.distributions.Normal has no Pallas equivalent; we return
    # its parameters (mean, scale) — scale is the constant sqrt(sigmasquared).
    scale = jnp.sqrt(jnp.float32(5.0))
    return mean, scale


def init_policy_params(key, state_space, action_space, hidden=64):
    """Matches Policy.init_weights(): weights ~ N(0, 1), biases = 0."""
    k1, k2 = jax.random.split(key)
    # PyTorch stores Linear weight as [out, in]; we store transposed [in, out].
    w1 = jax.random.normal(k1, (state_space, hidden), dtype=jnp.float32)
    b1 = jnp.zeros((1, hidden), dtype=jnp.float32)
    w2 = jax.random.normal(k2, (hidden, action_space), dtype=jnp.float32)
    b2 = jnp.zeros((1, action_space), dtype=jnp.float32)
    return w1, b1, w2, b2


if __name__ == "__main__":
    key = jax.random.PRNGKey(0)
    kx, kp = jax.random.split(key)

    batch = 8
    state_space = 8
    action_space = 4
    hidden = 64

    x = jax.random.normal(kx, (batch, state_space), dtype=jnp.float32)
    w1, b1, w2, b2 = init_policy_params(kp, state_space, action_space, hidden)

    mean, scale = policy_forward(x, w1, b1, w2, b2)
    jax.block_until_ready(mean)

    # Sanity check against plain-JAX reference.
    h_ref = jnp.maximum(x @ w1 + b1, 0.0)
    mean_ref = h_ref @ w2 + b2
    assert jnp.allclose(mean, mean_ref, atol=1e-4, rtol=1e-4), "mismatch vs reference"
    assert mean.shape == (batch, action_space)
    assert abs(float(scale) - math.sqrt(5.0)) < 1e-6

    print("KERNEL_OK")
</pallas_src>

<mosaic_0001>
module attributes {stable_mosaic.version = 11 : i64} {
  func.func @_policy_kernel(%arg0: i32, %arg1: memref<8x8xf32, #tpu.memory_space<vmem>>, %arg2: memref<8x64xf32, #tpu.memory_space<vmem>>, %arg3: memref<1x64xf32, #tpu.memory_space<vmem>>, %arg4: memref<64x128xf32, #tpu.memory_space<vmem>>, %arg5: memref<1x128xf32, #tpu.memory_space<vmem>>, %arg6: memref<8x128xf32, #tpu.memory_space<vmem>>) attributes {dimension_semantics = [#tpu.dimension_semantics<parallel>], iteration_bounds = array<i64: 1>, scalar_prefetch = 0 : i64, scratch_operands = 0 : i64, tpu.core_type = #tpu.core_type<tc>, window_params = [{transform_indices = @transform_0, window_bounds = array<i64: 8, 8>}, {pipeline_mode = #tpu.pipeline_mode<synchronous>, transform_indices = @transform_1, window_bounds = array<i64: 8, 64>}, {pipeline_mode = #tpu.pipeline_mode<synchronous>, transform_indices = @transform_2, window_bounds = array<i64: 1, 64>}, {pipeline_mode = #tpu.pipeline_mode<synchronous>, transform_indices = @transform_3, window_bounds = array<i64: 64, 128>}, {pipeline_mode = #tpu.pipeline_mode<synchronous>, transform_indices = @transform_4, window_bounds = array<i64: 1, 128>}, {transform_indices = @transform_5, window_bounds = array<i64: 8, 128>}]} {
    %c0 = arith.constant 0 : index
    %c0_0 = arith.constant 0 : index
    %0 = vector.load %arg1[%c0, %c0_0] : memref<8x8xf32, #tpu.memory_space<vmem>>, vector<8x8xf32>
    %c0_1 = arith.constant 0 : index
    %c0_2 = arith.constant 0 : index
    %1 = vector.load %arg2[%c0_1, %c0_2] : memref<8x64xf32, #tpu.memory_space<vmem>>, vector<8x64xf32>
    %cst = arith.constant dense<0.000000e+00> : vector<8x64xf32>
    %2 = tpu.matmul %0, %1, %cst {dimension_numbers = #tpu.dot_dimension_numbers<[1], [0], [0], [1], [0, 0, 1, 1], [], []>} : vector<8x8xf32>, vector<8x64xf32>, vector<8x64xf32> -> vector<8x64xf32>
    %c0_3 = arith.constant 0 : index
    %c0_4 = arith.constant 0 : index
    %3 = vector.load %arg3[%c0_3, %c0_4] : memref<1x64xf32, #tpu.memory_space<vmem>>, vector<1x64xf32>
    %4 = vector.broadcast %3 : vector<1x64xf32> to vector<8x64xf32>
    %5 = arith.addf %2, %4 : vector<8x64xf32>
    %cst_5 = arith.constant 0.000000e+00 : f32
    %6 = vector.broadcast %cst_5 : f32 to vector<8x64xf32>
    %7 = arith.maximumf %5, %6 : vector<8x64xf32>
    %c0_6 = arith.constant 0 : index
    %c0_7 = arith.constant 0 : index
    %8 = vector.load %arg4[%c0_6, %c0_7] : memref<64x128xf32, #tpu.memory_space<vmem>>, vector<64x128xf32>
    %cst_8 = arith.constant dense<0.000000e+00> : vector<8x128xf32>
    %9 = tpu.matmul %7, %8, %cst_8 {dimension_numbers = #tpu.dot_dimension_numbers<[1], [0], [0], [1], [0, 0, 1, 1], [], []>} : vector<8x64xf32>, vector<64x128xf32>, vector<8x128xf32> -> vector<8x128xf32>
    %c0_9 = arith.constant 0 : index
    %c0_10 = arith.constant 0 : index
    %10 = vector.load %arg5[%c0_9, %c0_10] : memref<1x128xf32, #tpu.memory_space<vmem>>, vector<1x128xf32>
    %11 = vector.broadcast %10 : vector<1x128xf32> to vector<8x128xf32>
    %12 = arith.addf %9, %11 : vector<8x128xf32>
    %c0_11 = arith.constant 0 : index
    %c0_12 = arith.constant 0 : index
    %13 = vector.load %arg6[%c0_11, %c0_12] : memref<8x128xf32, #tpu.memory_space<vmem>>, vector<8x128xf32>
    tpu.vector_store %arg6[%c0_11, %c0_12], %12 {strides = array<i32>} : memref<8x128xf32, #tpu.memory_space<vmem>>, vector<8x128xf32>,
    return
  }
  func.func @transform_0(%arg0: i32) -> (i32, i32) {
    %c0_i32 = arith.constant 0 : i32
    %c0_i32_0 = arith.constant 0 : i32
    return %arg0, %c0_i32 : i32, i32
  }
  func.func @transform_1(%arg0: i32) -> (i32, i32) {
    %c0_i32 = arith.constant 0 : i32
    %c0_i32_0 = arith.constant 0 : i32
    %c0_i32_1 = arith.constant 0 : i32
    return %c0_i32, %c0_i32_0 : i32, i32
  }
  func.func @transform_2(%arg0: i32) -> (i32, i32) {
    %c0_i32 = arith.constant 0 : i32
    %c0_i32_0 = arith.constant 0 : i32
    %c0_i32_1 = arith.constant 0 : i32
    return %c0_i32, %c0_i32_0 : i32, i32
  }
  func.func @transform_3(%arg0: i32) -> (i32, i32) {
    %c0_i32 = arith.constant 0 : i32
    %c0_i32_0 = arith.constant 0 : i32
    %c0_i32_1 = arith.constant 0 : i32
    return %c0_i32, %c0_i32_0 : i32, i32
  }
  func.func @transform_4(%arg0: i32) -> (i32, i32) {
    %c0_i32 = arith.constant 0 : i32
    %c0_i32_0 = arith.constant 0 : i32
    %c0_i32_1 = arith.constant 0 : i32
    return %c0_i32, %c0_i32_0 : i32, i32
  }
  func.func @transform_5(%arg0: i32) -> (i32, i32) {
    %c0_i32 = arith.constant 0 : i32
    %c0_i32_0 = arith.constant 0 : i32
    return %arg0, %c0_i32 : i32, i32
  }
}

</mosaic_0001>

<bundles_post_ra>
// kernel: tpu_custom_call.1
= control target key start
LH: loop header
LB: loop body
LE: loop exit
PB: predicated region body
PF: predicated region fallthrough
CT: control target
= control target key end

     0   :  { %10 = vsyncpa [#allocation3], 0  ;;  %s316_s0 = inlined_call_operand.hbm [shape: f32[8,8], index: 0, kind: input, shape index: {}]   ;;  %s317_s1 = inlined_call_operand.hbm [shape: f32[8,64], index: 1, kind: input, shape index: {}]   ;;  %s318_s2 = inlined_call_operand.vmem [shape: f32[1,64], index: 2, kind: input, shape index: {}]   ;;  %s319_s3 = inlined_call_operand.hbm [shape: f32[64,128], index: 3, kind: input, shape index: {}]   ;;  %s320_s4 = inlined_call_operand.vmem [shape: f32[1,128], index: 4, kind: input, shape index: {}]   ;;  %s321_s5 = inlined_call_operand.hbm [shape: f32[8,128], index: 5, kind: output, shape index: {}]  }
   0x1   :  { %11 = vsyncpa [#allocation6], 0  ;;  %s29_s20 = sshll.u32 %s317_s1, 4  ;;  %s30_s20 = int_to_ptr.hbm [resolvable:$true] %s29_s20 }
   0x2   :  { %12 = vsyncpa [#allocation4], 0  ;;  %s262_s21 = smov [#allocation5]   ;;  %s18_s25 = sshll.u32 %s316_s0, 4  ;;  %s19_s25 = int_to_ptr.hbm [resolvable:$true] %s18_s25 }
   0x3   :  { %s31_s22 = sshll.u32 %s262_s21, 4  ;;  %s263_s26 = smov [#allocation2]   ;;  %s32_s22 = int_to_ptr.vmem [resolvable:$true] %s31_s22 }
   0x4   :  { %34 = dma.hbm_to_vmem [thread:$0]  %s30_s20, 128, %s32_s22, [#allocation6]  }
   0x5   :  { %s20_s27 = sshll.u32 %s263_s26, 4  ;;  %s41_s30 = sshll.u32 %s319_s3, 4  ;;  %s21_s27 = int_to_ptr.vmem [resolvable:$true] %s20_s27  ;;  %s42_s30 = int_to_ptr.hbm [resolvable:$true] %s41_s30 }
   0x6   :  { %23 = dma.hbm_to_vmem [thread:$0]  %s19_s25, 128, %s21_s27, [#allocation3]  }
   0x7   :  { %s264_s1 = smov [#allocation7]   ;;  %s265_s7 = smov 128  }
   0x8   :  { %s43_s6 = sshll.u32 %s264_s1, 4  ;;  %s266_s8 = smov 8   ;;  %s44_s6 = int_to_ptr.vmem [resolvable:$true] %s43_s6 }
   0x9   :  { %49 = dma.hbm_to_vmem [thread:$0]  %s42_s30, 1024, %s44_s6, [#allocation6], %s265_s7, %s265_s7, %s266_s8  }
   0xa   :  { %256 = dma.done.wait [#allocation3], 128  }
   0xb   :  { %257 = vsyncadd [#allocation3], 4294967168 }
   0xc   :  { %258 = dma.done.wait [#allocation6], 1152  }
   0xd   :  { %259 = vsyncadd [#allocation6], 4294966144  ;;  %vm70_vm0 = vcmask 64512   ;;  %v65_v0 = vld [vmem:[#allocation5] sm:$0xff]  ;;  %v64_v1 = vld [vmem:[#allocation2] sm:$0xff]  ;;  %vm107_vm1 = vcmask 523264  }
   0xe   :  { %v102_v2 = vld [vmem:[#allocation7 + $0x38] sm:$0xff]  ;;  %89 = vmatpush.msra.mxu0 %v65_v0  ;;  %v101_v3 = vld [vmem:[#allocation7 + $0x30] sm:$0xff]  ;;  %v100_v4 = vld [vmem:[#allocation7 + $0x28] sm:$0xff]  ;;  %s267_s11 = smov [#allocation8]   ;;  %s139_s15 = sshll.u32 %s321_s5, 4  ;;  %s140_s15 = int_to_ptr.hbm [resolvable:$true] %s139_s15 }
   0xf   :  { %119 = vmatpush.msra.mxu1 %v102_v2  ;;  %150 = vmatmul.msk.f32.vlgmr.msra.gmra.mxu0 %vm70_vm0, %v64_v1  ;;  %v99_v5 = vld [vmem:[#allocation7 + $0x20] sm:$0xff]  ;;  %v98_v6 = vld [vmem:[#allocation7 + $0x18] sm:$0xff]  ;;  %v97_v7 = vld [vmem:[#allocation7 + $0x10] sm:$0xff]  ;;  %s137_s12 = sshll.u32 %s267_s11, 4  ;;  %s138_s12 = int_to_ptr.vmem [resolvable:$true] %s137_s12 }
  0x10   :  { %v96_v8 = vld [vmem:[#allocation7 + $0x8] sm:$0xff]  ;;  %v95_v9 = vld [vmem:[#allocation7] sm:$0xff]  ;;  %v158_v10 = vld [vmem:[%s318_s2] ss:$0 sm:$0xff] }
  0x11   :  { %120 = vmatpush.msra.mxu1 %v101_v3  ;;  %v159_v14 = vld [vmem:[%s320_s4] ss:$0 sm:$0xff] }
  0x13   :  { %121 = vmatpush.msra.mxu1 %v100_v4 }
  0x15   :  { %122 = vmatpush.msra.mxu1 %v99_v5 }
  0x17   :  { %123 = vmatpush.msra.mxu1 %v98_v6 }
  0x19   :  { %124 = vmatpush.msra.mxu1 %v97_v7 }
  0x1b   :  { %125 = vmatpush.msra.mxu1 %v96_v8 }
  0x1d   :  { %126 = vmatpush.msra.mxu1 %v95_v9 }
  0x8c   :  { %v91_v11 = vpop.f32.mrf.mxu0 }
  0x8d   :  { %v92_v12 = vadd.f32 %v158_v10, %v91_v11 }
  0x8f   :  { %v94_v13 = vmax.f32 %v92_v12, 0.0 }
  0x91   :  { %151 = vmatmul.msk.f32.vlgmr.msra.gmra.mxu1 %vm107_vm1, %v94_v13 }
 0x10e   :  { %v128_v15 = vpop.f32.mrf.mxu1 }
 0x10f   :  { %v129_v16 = vadd.f32 %v159_v14, %v128_v15 }
 0x111   :  { %131 = vst [vmem:[#allocation8] sm:$0xff] %v129_v16 }
 0x112   :  { %142 = dma.vmem_to_hbm [thread:$0]  %s138_s12, 128, %s140_s15, [#allocation4]  }
 0x113   :  { %260 = dma.done.wait [#allocation4], 128  }
 0x114   :  { %261 = vsyncadd [#allocation4], 4294967168 }
 0x115   :  { %147 = vsyncpa [#allocation3], 1 }
 0x116   :  { %148 = vsyncpa [#allocation6], 1 }
 0x117   :  { %149 = vsyncpa [#allocation4], 1 }

</bundles_post_ra>
